<compile_context>
chip_gen: v5e
topology: v5e:2x2
jax: 0.10.0
libtpu: 0.0.40
codegen_flags: <defaults>
</compile_context>

<pallas_src>
import math

import jax
import jax.numpy as jnp
from jax.experimental import pallas as pl
from jax.experimental.pallas import tpu as pltpu


def _round_up(x, m):
    return ((x + m - 1) // m) * m


def _make_dense_kernel(fin):
    """Kernel over a sublane/lane-dense batch tile.

    Refs:
      w_ref: (fin,)            float32, SMEM
      b_ref: (1,)              float32, SMEM
      x_ref: (fin, tbc, 128)   float32, VMEM
      o_ref: (tbc, 128)        float32, VMEM
    """

    def kernel(w_ref, b_ref, x_ref, o_ref):
        acc = x_ref[0] * w_ref[0]
        for k in range(1, fin):              # unrolled (fin == 3): pure VPU FMAs
            acc = acc + x_ref[k] * w_ref[k]
        o_ref[...] = acc + b_ref[0]

    return kernel


def _make_2d_kernel(fin):
    """Fallback kernel (ragged batch): lane-dense, sublane-padded blocks.

    Refs:
      w_ref: (fin,)    float32, SMEM
      b_ref: (1,)      float32, SMEM
      x_ref: (fin, tb) float32, VMEM
      o_ref: (1, tb)   float32, VMEM
    """

    def kernel(w_ref, b_ref, x_ref, o_ref):
        acc = x_ref[0:1, :] * w_ref[0]
        for k in range(1, fin):
            acc = acc + x_ref[k:k + 1, :] * w_ref[k]
        o_ref[...] = acc + b_ref[0]

    return kernel


def mult_regress_forward(x, weight, bias, *, block_b=262144, min_pallas_batch=16384):
    """Forward pass of MultRegress: out = x @ weight.T + bias.

    Args:
      x:      (B, 3) or (3,) input (cast to float32).
      weight: (1, 3) float32 (PyTorch nn.Linear layout).
      bias:   (1,)   float32.
      block_b: target batch-tile size in rows (rounded to 128-row chunks).
      min_pallas_batch: below this batch size, compute in plain jnp.
    Returns:
      (B, 1) float32 (or (1,) for a 1-D input).
    """
    x = jnp.asarray(x, jnp.float32)
    if x.ndim == 1:
        return mult_regress_forward(
            x[None], weight, bias, block_b=block_b,
            min_pallas_batch=min_pallas_batch)[0]

    B, fin = x.shape
    fout = weight.shape[0]
    assert fout == 1, "MultRegress has a single output feature"

    w_flat = weight.reshape(fin).astype(jnp.float32)   # (3,)  -> SMEM
    b_flat = bias.reshape(fout).astype(jnp.float32)    # (1,)  -> SMEM

    # Small-batch fast path: fixed launch / grid-step costs dominate below this.
    if B < max(min_pallas_batch, 128):
        return x @ w_flat.reshape(fin, fout) + b_flat

    compiler_params = pltpu.CompilerParams(
        dimension_semantics=("parallel",),      # shard batch tiles across TCs
        vmem_limit_bytes=32 * 1024 * 1024,      # safe headroom on v5e/v6e/v7x
    )
    cost = pl.CostEstimate(
        flops=2 * fin * B,                       # 3 mul + 3 add per row
        transcendentals=0,
        bytes_accessed=4 * (fin + 1) * B + 4 * (fin + 1),   # kernel HBM traffic
    )

    # Feature-major layout so batch sits on the 128-lane axis.
    x_t = x.T                                              # (3, B)

    chunks = B // 128                                      # whole 128-row chunks

    if B % 128 == 0 and chunks >= 8:
        # ---- dense path: blocks are stacks of full (8,128) slabs ----
        tbc_req = max(8, _round_up(block_b, 128) // 128)         # rows/128 per tile
        tbc_cap = _round_up(pl.cdiv(chunks, 4), 8)               # keep >= ~4 tiles
        tbc = max(8, min(tbc_req, tbc_cap))
        grid = (pl.cdiv(chunks, tbc),)

        x3 = x_t.reshape(fin, chunks, 128)                       # free reshape

        out = pl.pallas_call(
            _make_dense_kernel(fin),
            out_shape=jax.ShapeDtypeStruct((chunks, 128), jnp.float32),
            grid=grid,
            in_specs=[
                pl.BlockSpec(memory_space=pltpu.MemorySpace.SMEM),   # weight
                pl.BlockSpec(memory_space=pltpu.MemorySpace.SMEM),   # bias
                pl.BlockSpec((fin, tbc, 128), lambda i: (0, i, 0)),  # x tile
            ],
            out_specs=pl.BlockSpec((tbc, 128), lambda i: (i, 0)),
            compiler_params=compiler_params,
            cost_estimate=cost,
        )(w_flat, b_flat, x3)

        return out.reshape(B, fout)                              # free reshape

    # ---- ragged fallback: 2-D (3, B)/(1, B), pad-free cdiv grid ----
    tb_req = max(128, _round_up(block_b, 128))
    tb_cap = _round_up(pl.cdiv(B, 4), 128)                       # keep >= ~4 tiles
    tb = max(128, min(tb_req, tb_cap, 131072))                   # VMEM headroom
    grid = (pl.cdiv(B, tb),)                                     # last tile masked

    out = pl.pallas_call(
        _make_2d_kernel(fin),
        out_shape=jax.ShapeDtypeStruct((fout, B), jnp.float32),
        grid=grid,
        in_specs=[
            pl.BlockSpec(memory_space=pltpu.MemorySpace.SMEM),       # weight
            pl.BlockSpec(memory_space=pltpu.MemorySpace.SMEM),       # bias
            pl.BlockSpec((fin, tb), lambda i: (0, i)),               # x tile
        ],
        out_specs=pl.BlockSpec((fout, tb), lambda i: (0, i)),
        compiler_params=compiler_params,
        cost_estimate=cost,
    )(w_flat, b_flat, x_t)

    return out.reshape(B, fout)                                   # (1,B)->(B,1), free


if __name__ == "__main__":
    key = jax.random.PRNGKey(0)
    k_w, k_b, k_x1, k_x2, k_x3 = jax.random.split(key, 5)

    fin, fout = 3, 1

    # nn.Linear default init: uniform(-1/sqrt(in_features), 1/sqrt(in_features)).
    bound = 1.0 / math.sqrt(fin)
    weight = jax.random.uniform(k_w, (fout, fin), jnp.float32, -bound, bound)
    bias = jax.random.uniform(k_b, (fout,), jnp.float32, -bound, bound)

    def ref_fn(xv):
        return xv.astype(jnp.float32) @ weight.T + bias

    # 1) The module's literal example (1-D input) + a tiny batch -> jnp fast path.
    x0 = jnp.array([2.0, 4.0, 8.0], jnp.float32)
    out0 = jax.block_until_ready(mult_regress_forward(x0, weight, bias))
    assert out0.shape == (fout,)
    assert jnp.allclose(out0, ref_fn(x0[None])[0], atol=1e-5, rtol=1e-5)

    x1 = jax.random.normal(k_x1, (8, fin), jnp.float32)
    out1 = jax.block_until_ready(mult_regress_forward(x1, weight, bias))
    assert out1.shape == (8, fout)
    assert jnp.allclose(out1, ref_fn(x1), atol=1e-5, rtol=1e-5)

    # 2) Dense kernel path: B % 128 == 0, forced kernel, multi-tile grid with a
    #    ragged last tile over the 128-row-chunk axis (2176 = 17 * 128).
    B2 = 2176
    x2 = jax.random.normal(k_x2, (B2, fin), jnp.float32)
    out2 = jax.block_until_ready(
        mult_regress_forward(x2, weight, bias, block_b=1024, min_pallas_batch=1))
    assert out2.shape == (B2, fout)
    assert jnp.allclose(out2, ref_fn(x2), atol=1e-5, rtol=1e-5)

    # 3) Ragged batch (pad-free cdiv grid, masked last tile) through the 2-D path.
    B3 = 600
    x3 = jax.random.normal(k_x3, (B3, fin), jnp.float32)
    out3 = jax.block_until_ready(
        mult_regress_forward(x3, weight, bias, block_b=256, min_pallas_batch=1))
    assert out3.shape == (B3, fout)
    assert jnp.allclose(out3, ref_fn(x3), atol=1e-5, rtol=1e-5)

    print("KERNEL_OK")
</pallas_src>

<mosaic_0001>
module attributes {stable_mosaic.version = 11 : i64} {
  func.func @kernel(%arg0: i32, %arg1: memref<3xf32, #tpu.memory_space<smem>>, %arg2: memref<1xf32, #tpu.memory_space<smem>>, %arg3: memref<3x8x128xf32, #tpu.memory_space<vmem>>, %arg4: memref<8x128xf32, #tpu.memory_space<vmem>>) attributes {dimension_semantics = [#tpu.dimension_semantics<parallel>], iteration_bounds = array<i64: 3>, scalar_prefetch = 0 : i64, scratch_operands = 0 : i64, tpu.core_type = #tpu.core_type<tc>, window_params = [{transform_indices = @transform_0, window_bounds = array<i64: 3>}, {transform_indices = @transform_1, window_bounds = array<i64: 1>}, {transform_indices = @transform_2, window_bounds = array<i64: 3, 8, 128>}, {transform_indices = @transform_3, window_bounds = array<i64: 8, 128>}]} {
    %c0 = arith.constant 0 : index
    %c0_0 = arith.constant 0 : index
    %c0_1 = arith.constant 0 : index
    %0 = vector.load %arg3[%c0, %c0_0, %c0_1] : memref<3x8x128xf32, #tpu.memory_space<vmem>>, vector<1x8x128xf32>
    %1 = vector.shape_cast %0 : vector<1x8x128xf32> to vector<8x128xf32>
    %c0_2 = arith.constant 0 : index
    %2 = memref.load %arg1[%c0_2] : memref<3xf32, #tpu.memory_space<smem>>
    %3 = vector.broadcast %2 : f32 to vector<8x128xf32>
    %4 = arith.mulf %1, %3 : vector<8x128xf32>
    %c1 = arith.constant 1 : index
    %c0_3 = arith.constant 0 : index
    %c0_4 = arith.constant 0 : index
    %5 = vector.load %arg3[%c1, %c0_3, %c0_4] : memref<3x8x128xf32, #tpu.memory_space<vmem>>, vector<1x8x128xf32>
    %6 = vector.shape_cast %5 : vector<1x8x128xf32> to vector<8x128xf32>
    %c1_5 = arith.constant 1 : index
    %7 = memref.load %arg1[%c1_5] : memref<3xf32, #tpu.memory_space<smem>>
    %8 = vector.broadcast %7 : f32 to vector<8x128xf32>
    %9 = arith.mulf %6, %8 : vector<8x128xf32>
    %10 = arith.addf %4, %9 : vector<8x128xf32>
    %c2 = arith.constant 2 : index
    %c0_6 = arith.constant 0 : index
    %c0_7 = arith.constant 0 : index
    %11 = vector.load %arg3[%c2, %c0_6, %c0_7] : memref<3x8x128xf32, #tpu.memory_space<vmem>>, vector<1x8x128xf32>
    %12 = vector.shape_cast %11 : vector<1x8x128xf32> to vector<8x128xf32>
    %c2_8 = arith.constant 2 : index
    %13 = memref.load %arg1[%c2_8] : memref<3xf32, #tpu.memory_space<smem>>
    %14 = vector.broadcast %13 : f32 to vector<8x128xf32>
    %15 = arith.mulf %12, %14 : vector<8x128xf32>
    %16 = arith.addf %10, %15 : vector<8x128xf32>
    %c0_9 = arith.constant 0 : index
    %17 = memref.load %arg2[%c0_9] : memref<1xf32, #tpu.memory_space<smem>>
    %18 = vector.broadcast %17 : f32 to vector<8x128xf32>
    %19 = arith.addf %16, %18 : vector<8x128xf32>
    %c0_10 = arith.constant 0 : index
    %c0_11 = arith.constant 0 : index
    %20 = vector.load %arg4[%c0_10, %c0_11] : memref<8x128xf32, #tpu.memory_space<vmem>>, vector<8x128xf32>
    tpu.vector_store %arg4[%c0_10, %c0_11], %19 {strides = array<i32>} : memref<8x128xf32, #tpu.memory_space<vmem>>, vector<8x128xf32>,
    return
  }
  func.func @transform_0(%arg0: i32) -> i32 {
    %c0_i32 = arith.constant 0 : i32
    %c0_i32_0 = arith.constant 0 : i32
    return %c0_i32 : i32
  }
  func.func @transform_1(%arg0: i32) -> i32 {
    %c0_i32 = arith.constant 0 : i32
    %c0_i32_0 = arith.constant 0 : i32
    return %c0_i32 : i32
  }
  func.func @transform_2(%arg0: i32) -> (i32, i32, i32) {
    %c0_i32 = arith.constant 0 : i32
    %c0_i32_0 = arith.constant 0 : i32
    %c0_i32_1 = arith.constant 0 : i32
    return %c0_i32, %arg0, %c0_i32_0 : i32, i32, i32
  }
  func.func @transform_3(%arg0: i32) -> (i32, i32) {
    %c0_i32 = arith.constant 0 : i32
    %c0_i32_0 = arith.constant 0 : i32
    return %arg0, %c0_i32 : i32, i32
  }
}

</mosaic_0001>

<bundles_post_ra>
// kernel: tpu_custom_call.1
= control target key start
LH: loop header
LB: loop body
LE: loop exit
PB: predicated region body
PF: predicated region fallthrough
CT: control target
= control target key end

     0   :  { %s631_s0 = inlined_call_operand.vmem [shape: f32[3], index: 0, kind: input, shape index: {}]   ;;  %s632_s1 = inlined_call_operand.<no memory space> [shape: f32[1], index: 1, kind: input, shape index: {}]   ;;  %s633_s2 = inlined_call_operand.vmem [shape: f32[3,17,128], index: 2, kind: input, shape index: {}]   ;;  %s634_s3 = inlined_call_operand.hbm [shape: f32[17,128], index: 3, kind: output, shape index: {}]  }
   0x1   :  { %8 = sst [smem:[#allocation2]] %s632_s1 }
   0x2   :  { %9 = vsyncpa [#allocation5], 0 }
   0x3   :  { %10 = vsyncpa [#allocation4], 0 }
   0x4   :  { %12 = vsyncpa [#allocation4 + $0x1], 0  ;;  %s515_s14 = smov 0   ;;  %s517_s15 = smov 0  }
   0x5   :  { %s519_s16 = smov 0   ;;  %s521_s17 = smov 0  }
   0x6 LB: > { %s536_s1 = sadd.s32 4294967295, %s489_s17   ;;  %s340_s18 = sadd.s32 4294967294, %s489_s17   ;;  %s489_s17 = sphi %s521_s17, %s642_s17   ;;  %s485_s16 = sphi %s519_s16, %s641_s16   ;;  %s481_s15 = sphi %s517_s15, %s640_s15   ;;  %s477_s14 = sphi %s515_s14, %s639_s14  }
   0x7   : > { %s540_s19 = sadd.s32 1, %s489_s17   ;;  %s67_s20 = sadd.s32 1, %s485_s16 }
   0x8   : > { %s64_s21 = ssub.s32 %s489_s17, %s540_s19  ;;  %p74_p0 = scmp.ne.s32.totalorder %s485_s16, %s481_s15 }
   0x9   : > { %p65_p1 = scmp.eq.s32.totalorder %s64_s21, 0  ;;  %p75_p2 = scmp.eq.s32.totalorder %s489_s17, 0 }
   0xa   : > { %p104_p3 = scmp.eq.s32.totalorder %s536_s1, 2  ;;  %p109_p4 = scmp.ne.s32.totalorder %s481_s15, %s477_s14 }
   0xb   : > { %s552_s22 = scalar_select %p65_p1, %s485_s16, %s67_s20  }
   0xc   : > { %p554_p5 = por %p75_p2, %p74_p0  ;;  %p558_p6 = por %p104_p3, %p74_p0 }
   0xd   : > { %p110_p7 = scmp.eq.s32.totalorder %s340_s18, 2  ;;  %p341_p8 = scmp.ge.s32.totalorder %s489_s17, 1 }
   0xe   : > { %p117_p9 = scmp.lt.s32.totalorder %s489_s17, 4  ;;  %p372_p11 = scmp.eq.s32.totalorder %s536_s1, 0 }
   0xf   : > { %p564_p10 = por %p110_p7, %p109_p4  ;;  %s129_s29 = sshll.u32 %s631_s0, 4  ;;  %s130_s29 = int_to_ptr.vmem [resolvable:$true] %s129_s29 }
  0x10   : > { %p569_p12 = pnand %p341_p8, %p117_p9  ;;  %s491_s30 = smov [#allocation3]  }
  0x11   : > { %p343_p1 = scmp.ge.s32.totalorder %s489_s17, 3 }
  0x12   : > { %p364_p13 = pneg %p569_p12 }
  0x13   : > { %139 = sbr.rel (%p343_p1) target bundleno = 31 (0x1f), region = 24 }
  0x14   : > { %p365_p0 = pnand %p372_p11, %p364_p13 }
  0x16   : > { %367 = dma.vmem_to_smem (!%p365_p0), %s130_s29, 16, %s491_s30, [#allocation5]  }
  0x18   : > { %142 = sbr.rel (!%p554_p5) target bundleno = 31 (0x1f), region = 28  ;;  %s144_s4 = sand.u32 (%p554_p5), 1, %s485_s16  }
  0x19   : > { %s344_s5 = sshll.u32 (%p554_p5), %s489_s17, 3  ;;  %s356_s6 = smul.u32 (%p554_p5), 24, %s144_s4 }
  0x1a   : > { %s148_s9 = scalar_lea.vmem (%p554_p5), %s633_s2, %s344_s5 }
  0x1b   : > { %v181_v0 = vld [vmem:[%s148_s9] sm:$0xff] (%p554_p5)  ;;  %v183_v1 = vld [vmem:[%s148_s9 + $0x18] sm:$0xff] (%p554_p5)  ;;  %v185_v2 = vld [vmem:[%s148_s9 + $0x30] sm:$0xff] (%p554_p5)  ;;  %s146_s10 = scalar_lea.vmem (%p554_p5), [#allocation6], %s356_s6 }
  0x1c   : > { %182 = vst [vmem:[%s146_s10] sm:$0xff] (%p554_p5), %v181_v0 }
  0x1d   : > { %184 = vst [vmem:[%s146_s10 + $0x8] sm:$0xff] %v183_v1 }
  0x1e   : > { %186 = vst [vmem:[%s146_s10 + $0x10] sm:$0xff] %v185_v2 }
  0x1f PF: > { %195 = sbr.rel (%p569_p12) target bundleno = 61 (0x3d), region = 66 }
  0x24   : > { %468 = dma.done.wait (%p372_p11), [#allocation5], 16  }
  0x25   : > { %470 = vsyncadd (%p372_p11), [#allocation5], 4294967280  ;;  %s595_s11 = sand.u32 1, %s481_s15  }
  0x26   : > { %s357_s12 = smul.u32 24, %s595_s11 }
  0x28   : > { %s205_s13 = scalar_lea.vmem [#allocation6], %s357_s12 }
  0x29   : > { %209 = sfence }
  0x2a   : > { %s228_s18 = sld [smem:[#allocation3]]  ;;  %s347_s26 = sshll.u32 %s595_s11, 3  ;;  %v227_v3 = vld [vmem:[%s205_s13] sm:$0xff]  ;;  %v348_v4 = vld [vmem:[%s205_s13 + $0x8] sm:$0xff]  ;;  %v350_v6 = vld [vmem:[%s205_s13 + $0x10] sm:$0xff] }
  0x2b   : > { %s349_s20 = sld [smem:[#allocation3 + $0x1]]  ;;  %s353_s27 = sshll.u32 %s536_s1, 3 }
  0x2c   : > { %s351_s21 = sld [smem:[#allocation3 + $0x2]]  ;;  %s258_s30 = scalar_lea.hbm %s634_s3, %s353_s27 }
  0x2d   : > { %s243_s23 = sld [smem:[#allocation2]]  ;;  %s226_s4 = scalar_lea.vmem [#allocation7], %s347_s26 }
  0x2e   : > { %s260_s5 = sshll.u32 %s226_s4, 4  ;;  %s262_s6 = sshll.u32 %s258_s30, 4  ;;  %s261_s5 = int_to_ptr.vmem [resolvable:$true] %s260_s5  ;;  %s263_s6 = int_to_ptr.hbm [resolvable:$true] %s262_s6 }
  0x2f   : > { %s248_s1 = scalar_lea.sflag [#allocation4], %s595_s11  ;;  %s437_s7 = sshra.s32 %s263_s6, 4  ;;  %s438_s7 = int_to_ptr.hbm [resolvable:$true] %s437_s7 }
  0x30   : > { %v229_v5 = vstv %s228_s18  ;;  %s439_s8 = scalar_lea.hbm %s438_s7, 8  ;;  %s443_s12 = scalar_lea.hbm %s634_s3, 24 }
  0x31   : > { %v230_v7 = vmul.f32 %v229_v5, %v227_v3  ;;  %v234_v8 = vstv %s349_s20  ;;  %p440_p2 = scmp.ne.s32.totalorder %s438_s7, %s439_s8  ;;  %p444_p5 = scmp.lt.s32.totalorder %s438_s7, %s634_s3 }
  0x32   : > { %v235_v9 = vmul.f32 %v348_v4, %v234_v8  ;;  %v240_v10 = vstv %s351_s21  ;;  %p445_p7 = scmp.lt.s32.totalorder %s443_s12, %s439_s8 }
  0x33   : > { %v241_v11 = vmul.f32 %v350_v6, %v240_v10  ;;  %v244_v13 = vstv %s243_s23  ;;  %p441_p3 = pnand %p440_p2, %p558_p6 }
  0x34   : > { %v236_v12 = vadd.f32 %v235_v9, %v230_v7  ;;  %p446_p8 = por %p445_p7, %p444_p5 }
  0x35   : > { %p442_p4 = pneg %p441_p3 }
  0x36   : > { %v242_v14 = vadd.f32 %v241_v11, %v236_v12 }
  0x37   : > { %p447_p9 = pnand %p446_p8, %p442_p4 }
  0x38   : > { %v245_v15 = vadd.f32 %v244_v13, %v242_v14 }
  0x3a   : > { %246 = vst [vmem:[%s226_s4] sm:$0xff] %v245_v15 }
  0x3b   : > { %450 = shalt.err (!%p447_p9)
}
  0x3c   : > { %362 = dma.vmem_to_hbm [thread:$0]  (%p558_p6), %s261_s5, 128, %s263_s6, %s248_s1  }
  0x3d PF: > { %p374_p11 = scmp.ge.s32.totalorder %s489_s17, 2  ;;  %s274_s11 = sand.u32 1, %s477_s14  }
  0x3e   : > { %s275_s20 = scalar_lea.sflag [#allocation4], %s274_s11 }
  0x3f   : > { %p369_p12 = pnand %p374_p11, %p564_p10 }
  0x41   : > { %p370_p13 = pneg %p369_p12 }
  0x43   : > { %472 = dma.done.wait (%p370_p13), %s275_s20, 128  }
  0x44   : > { %474 = vsyncadd (%p370_p13), %s275_s20, 4294967168  ;;  %p15_p0 = scmp.ge.s32.totalorder %s540_s19, 5   ;;  %s639_s14 = smov %s481_s15 }
  0x45   : > { %s640_s15 = smov %s485_s16  ;;  %s641_s16 = smov %s552_s22 }
  0x46   : > { %s642_s17 = smov %s540_s19  ;;  %17 = sbr.rel (!%p15_p0) target bundleno = 6 (0x6), region = 117 }
  0x4b   :  { %281 = vsyncpa [#allocation4], 1 }
  0x4c   :  { %283 = vsyncpa [#allocation4 + $0x1], 1 }
  0x4d   :  { %284 = vsyncpa [#allocation5], 1 }
  0x4e   :  { %286 = vsyncpa [#allocation5 + $0x1], 1 }

</bundles_post_ra>
